<compile_context>
chip_gen: v7x
topology: tpu7x:2x2x1
jax: 0.10.0
libtpu: 0.0.40
codegen_flags: <defaults>
</compile_context>

<pallas_src>
import jax
import jax.numpy as jnp
from jax import lax
from jax.experimental import pallas as pl
from jax.experimental.pallas import tpu as pltpu


def _vmem_capacity_bytes() -> int:
    """Per-core physical VMEM, queried from the backend (generation-aware)."""
    try:
        info = pltpu.get_tpu_info()
        cap = getattr(info, "vmem_capacity_bytes", None)
        if cap:
            return int(cap)
    except Exception:
        pass
    # Conservative fallback: assume the smallest modern VMEM (v7x, 64 MiB/TC).
    return 64 << 20


def _make_window_split_kernel(wr: int, ncols: int, ws: int, C: int):
    """Kernel over one block: (1, wr*ws, ncols*ws, C) -> (wr*ncols, ws*ws, C)."""
    n_tiles = wr * ncols

    if n_tiles <= 16:
        # Small number of windows per block: fully static, compiler-friendly.
        def kernel(x_ref, o_ref):
            for r in range(wr):
                for j in range(ncols):
                    tile = x_ref[0, r * ws:(r + 1) * ws, j * ws:(j + 1) * ws, :]
                    o_ref[r * ncols + j, :, :] = tile.reshape(ws * ws, C)
    else:
        # Many windows per block (real Swin sizes): counted loop keeps vreg
        # pressure and code size flat; copies are hidden under the DMAs anyway.
        unroll = min(8, max(1, ncols))

        def kernel(x_ref, o_ref):
            def body(t, carry):
                r = t // ncols
                j = t - r * ncols
                row0 = pl.multiple_of(r * ws, ws)
                col0 = pl.multiple_of(j * ws, ws)
                tile = x_ref[0, pl.ds(row0, ws), pl.ds(col0, ws), :]
                o_ref[t, :, :] = tile.reshape(ws * ws, C)
                return carry

            lax.fori_loop(0, n_tiles, body, 0, unroll=unroll)

    return kernel


def _window_split_pallas(x: jax.Array, ws: int, max_block_bytes) -> jax.Array:
    """Core pallas_call on a (B, H, W, C) array with >=32-bit elements."""
    B, H, W, C = x.shape
    n_wh, n_ww = H // ws, W // ws
    itemsize = jnp.dtype(x.dtype).itemsize

    # --- generation-aware block budget -------------------------------------
    vmem_cap = _vmem_capacity_bytes()
    # double-buffered in+out ~= 4 * block_bytes; keep that within ~75% of VMEM
    # => block_bytes <= 3/16 of VMEM (12 MiB on v7x, 24 MiB on v5e/v6e).
    derived_cap = (3 * vmem_cap) // 16
    if max_block_bytes is None:
        max_block_bytes = derived_cap
    max_block_bytes = min(int(max_block_bytes), derived_cap)

    def pick(divs, bytes_fn, steps_fn):
        feasible = [d for d in divs if bytes_fn(d) <= max_block_bytes]
        if not feasible:
            return None
        # Keep >=4 total grid steps for pipeline overlap, prefer an even step
        # count (v7x 2-TC balance), then take the largest block that remains.
        cand = [d for d in feasible if steps_fn(d) >= 4] or feasible
        even = [d for d in cand if steps_fn(d) % 2 == 0] or cand
        return max(even)

    row_band_bytes = ws * W * C * itemsize
    row_divs = [d for d in range(1, n_wh + 1) if n_wh % d == 0]
    wr = pick(row_divs, lambda d: d * row_band_bytes,
              lambda d: B * (n_wh // d))

    if wr is not None:
        # --- row-band mode ---------------------------------------------------
        ncols = n_ww
        spb = n_wh // wr                      # steps per batch element
        grid = (B, spb)
        in_spec = pl.BlockSpec((1, wr * ws, W, C), lambda b, i: (b, i, 0, 0))
        out_spec = pl.BlockSpec((wr * n_ww, ws * ws, C),
                                lambda b, i: (b * spb + i, 0, 0))
        semantics = ("parallel", "parallel")
    else:
        # --- column-chunk fallback (one window row per step) -----------------
        wr = 1
        col_divs = [d for d in range(1, n_ww + 1) if n_ww % d == 0]
        wc = pick(col_divs, lambda d: ws * d * ws * C * itemsize,
                  lambda d: B * n_wh * (n_ww // d)) or 1
        # TODO(synk): if even a single window exceeds the budget we still emit
        # a single-window block and rely on the physical-VMEM clamp below.
        ncols = wc
        spc = n_ww // wc                      # column chunks per window row
        grid = (B, n_wh, spc)
        in_spec = pl.BlockSpec((1, ws, wc * ws, C),
                               lambda b, i, j: (b, i, j, 0))
        out_spec = pl.BlockSpec((wc, ws * ws, C),
                                lambda b, i, j: ((b * n_wh + i) * spc + j, 0, 0))
        semantics = ("parallel", "parallel", "parallel")

    block_in_bytes = wr * ws * ncols * ws * C * itemsize
    block_out_bytes = (wr * ncols) * ws * ws * C * itemsize
    vmem_limit = 2 * (block_in_bytes + block_out_bytes) + (4 << 20)
    vmem_limit = max(vmem_limit, 32 << 20)
    # Never exceed the physical per-core VMEM (64 MiB on v7x, 128 MiB v5e/v6e).
    vmem_limit = int(min(vmem_limit, max(vmem_cap - (4 << 20), 32 << 20)))

    return pl.pallas_call(
        _make_window_split_kernel(wr, ncols, ws, C),
        out_shape=jax.ShapeDtypeStruct((B * n_wh * n_ww, ws * ws, C), x.dtype),
        grid_spec=pltpu.PrefetchScalarGridSpec(
            num_scalar_prefetch=0,
            grid=grid,
            in_specs=[in_spec],
            out_specs=out_spec,
        ),
        compiler_params=pltpu.CompilerParams(
            dimension_semantics=semantics,
            vmem_limit_bytes=vmem_limit,
        ),
    )(x)


def window_splitter(x: jax.Array, input_resolution: int, embedding_dim: int,
                    window_size: int, *, max_block_bytes=None) -> jax.Array:
    """B x H x W x C -> (B * num_windows) x window_size**2 x C."""
    B, H, W, C = x.shape
    assert H == W == input_resolution
    assert C == embedding_dim
    ws = window_size
    assert H % ws == 0 and W % ws == 0, "spatial dims must be divisible by window_size"

    dtype = x.dtype
    itemsize = jnp.dtype(dtype).itemsize
    if itemsize < 4:
        pack = 4 // itemsize
        if C % pack == 0:
            # View the channel axis as packed 32-bit words so the in-kernel
            # shuffle stays aligned 32-bit tile copies (bf16/fp16/int8).
            xp = lax.bitcast_convert_type(
                x.reshape(B, H, W, C // pack, pack), jnp.uint32)
            out_p = _window_split_pallas(xp, ws, max_block_bytes)
            out = lax.bitcast_convert_type(out_p, dtype)
            return out.reshape(-1, ws * ws, C)
        # TODO(synk): C not divisible by the 32-bit pack factor -> run the
        # sub-32-bit dtype directly (correct, but sublane-repack / masked-store
        # slow path).
    return _window_split_pallas(x, ws, max_block_bytes)


def _reference(x, window_size):
    B, H, W, C = x.shape
    ws = window_size
    xr = x.reshape(B, H // ws, ws, W // ws, ws, C)
    xr = jnp.transpose(xr, (0, 1, 3, 2, 4, 5))
    return xr.reshape(-1, ws * ws, C)


if __name__ == "__main__":
    key = jax.random.PRNGKey(0)

    # 1) Default path (row-band tiling, 4 grid steps): B=2, 16x16, ws=8, C=128.
    x = jax.random.normal(key, (2, 16, 16, 128), dtype=jnp.float32)
    out = jax.block_until_ready(window_splitter(x, 16, 128, 8))
    ref = _reference(x, 8)
    assert out.shape == ref.shape, (out.shape, ref.shape)
    assert jnp.array_equal(out, ref), "row-band path mismatch"

    # 2) Column-chunk fallback (tiny block budget forces it; 8 grid steps).
    out2 = jax.block_until_ready(
        window_splitter(x, 16, 128, 8, max_block_bytes=48 * 1024))
    assert jnp.array_equal(out2, ref), "column-chunk path mismatch"

    # 3) fori_loop copy path (many windows per block): B=1, 128x128, ws=8, C=128.
    x3 = jax.random.normal(jax.random.PRNGKey(0), (1, 128, 128, 128),
                           dtype=jnp.float32)
    out3 = jax.block_until_ready(window_splitter(x3, 128, 128, 8))
    assert jnp.array_equal(out3, _reference(x3, 8)), "fori_loop path mismatch"

    # 4) bf16 input handled via the u32 bitcast (same 32-bit-tile kernel).
    x4 = jax.random.normal(jax.random.PRNGKey(0),
                           (1, 16, 16, 256)).astype(jnp.bfloat16)
    out4 = jax.block_until_ready(window_splitter(x4, 16, 256, 8))
    assert jnp.array_equal(out4, _reference(x4, 8)), "bf16 path mismatch"

    print("KERNEL_OK")
</pallas_src>

<mosaic_0001>
module attributes {stable_mosaic.version = 11 : i64} {
  func.func @kernel(%arg0: i32, %arg1: i32, %arg2: memref<1x8x16x128xf32, #tpu.memory_space<vmem>>, %arg3: memref<2x64x128xf32, #tpu.memory_space<vmem>>) attributes {dimension_semantics = [#tpu.dimension_semantics<parallel>, #tpu.dimension_semantics<parallel>], iteration_bounds = array<i64: 2, 2>, scalar_prefetch = 0 : i64, scratch_operands = 0 : i64, tpu.core_type = #tpu.core_type<tc>, window_params = [{transform_indices = @transform_0, window_bounds = array<i64: 1, 8, 16, 128>}, {transform_indices = @transform_1, window_bounds = array<i64: 2, 64, 128>}]} {
    %c0 = arith.constant 0 : index
    %c0_0 = arith.constant 0 : index
    %c0_1 = arith.constant 0 : index
    %c0_2 = arith.constant 0 : index
    %0 = vector.load %arg2[%c0, %c0_0, %c0_1, %c0_2] : memref<1x8x16x128xf32, #tpu.memory_space<vmem>>, vector<1x8x8x128xf32>
    %1 = vector.shape_cast %0 : vector<1x8x8x128xf32> to vector<8x8x128xf32>
    %2 = vector.shape_cast %1 : vector<8x8x128xf32> to vector<64x128xf32>
    %c0_3 = arith.constant 0 : index
    %c0_4 = arith.constant 0 : index
    %c0_5 = arith.constant 0 : index
    %3 = vector.load %arg3[%c0_3, %c0_4, %c0_5] : memref<2x64x128xf32, #tpu.memory_space<vmem>>, vector<1x64x128xf32>
    %4 = vector.shape_cast %3 : vector<1x64x128xf32> to vector<64x128xf32>
    %5 = vector.shape_cast %2 : vector<64x128xf32> to vector<1x64x128xf32>
    tpu.vector_store %arg3[%c0_3, %c0_4, %c0_5], %5 {strides = array<i32>} : memref<2x64x128xf32, #tpu.memory_space<vmem>>, vector<1x64x128xf32>,
    %c0_6 = arith.constant 0 : index
    %c0_7 = arith.constant 0 : index
    %c8 = arith.constant 8 : index
    %c0_8 = arith.constant 0 : index
    %6 = vector.load %arg2[%c0_6, %c0_7, %c8, %c0_8] : memref<1x8x16x128xf32, #tpu.memory_space<vmem>>, vector<1x8x8x128xf32>
    %7 = vector.shape_cast %6 : vector<1x8x8x128xf32> to vector<8x8x128xf32>
    %8 = vector.shape_cast %7 : vector<8x8x128xf32> to vector<64x128xf32>
    %c1 = arith.constant 1 : index
    %c0_9 = arith.constant 0 : index
    %c0_10 = arith.constant 0 : index
    %9 = vector.load %arg3[%c1, %c0_9, %c0_10] : memref<2x64x128xf32, #tpu.memory_space<vmem>>, vector<1x64x128xf32>
    %10 = vector.shape_cast %9 : vector<1x64x128xf32> to vector<64x128xf32>
    %11 = vector.shape_cast %8 : vector<64x128xf32> to vector<1x64x128xf32>
    tpu.vector_store %arg3[%c1, %c0_9, %c0_10], %11 {strides = array<i32>} : memref<2x64x128xf32, #tpu.memory_space<vmem>>, vector<1x64x128xf32>,
    return
  }
  func.func @transform_0(%arg0: i32, %arg1: i32) -> (i32, i32, i32, i32) {
    %c0_i32 = arith.constant 0 : i32
    %c0_i32_0 = arith.constant 0 : i32
    %c0_i32_1 = arith.constant 0 : i32
    return %arg0, %arg1, %c0_i32, %c0_i32_0 : i32, i32, i32, i32
  }
  func.func @transform_1(%arg0: i32, %arg1: i32) -> (i32, i32, i32) {
    %c2_i32 = arith.constant 2 : i32
    %0 = arith.muli %arg0, %c2_i32 : i32
    %1 = arith.addi %0, %arg1 : i32
    %c0_i32 = arith.constant 0 : i32
    %c0_i32_0 = arith.constant 0 : i32
    %c0_i32_1 = arith.constant 0 : i32
    return %1, %c0_i32, %c0_i32_0 : i32, i32, i32
  }
}

</mosaic_0001>

<bundles_post_ra>
// kernel: tpu_custom_call.1
= control target key start
LH: loop header
LB: loop body
LE: loop exit
PB: predicated region body
PF: predicated region fallthrough
CT: control target
= control target key end

     0   :  { %6 = vsyncpa [#allocation3], 0  ;;  %s881_s0 = inlined_call_operand.hbm [shape: f32[2,16,16,128], index: 0, kind: input, shape index: {}]   ;;  %s882_s1 = inlined_call_operand.hbm [shape: f32[8,64,128], index: 1, kind: output, shape index: {}]  }
   0x1   :  { %8 = vsyncpa [#allocation3 + $0x1], 0 }
   0x2   :  { %9 = vsyncpa [#allocation4], 0 }
   0x3   :  { %11 = vsyncpa [#allocation4 + $0x1], 0  ;;  %s607_s6 = smov 0   ;;  %s609_s7 = smov 0  }
   0x4   :  { %s611_s8 = smov 0   ;;  %s613_s9 = smov 0  }
   0x5   :  { %s615_s10 = smov 0   ;;  %s617_s11 = smov 0  }
   0x6   :  { %s619_s12 = smov 0   ;;  %s621_s13 = smov 0  }
   0x7   :  { %s623_s14 = smov 0   ;;  %s625_s15 = smov 0  }
   0x8   :  { %s627_s16 = smov 0  }
   0x9 LB: > { %s299_s17 = sadd.s32 4294967295, %s589_s16   ;;  %s300_s18 = sadd.s32 4294967294, %s589_s16   ;;  %s589_s16 = sphi %s627_s16, %s17_s16   ;;  %s585_s15 = sphi %s625_s15, %s904_s15   ;;  %s581_s14 = sphi %s623_s14, %s903_s14   ;;  %s577_s13 = sphi %s621_s13, %s902_s13   ;;  %s573_s12 = sphi %s619_s12, %s901_s12   ;;  %s569_s11 = sphi %s617_s11, %s900_s11   ;;  %s565_s10 = sphi %s615_s10, %s899_s10   ;;  %s561_s9 = sphi %s613_s9, %s898_s9   ;;  %s557_s8 = sphi %s611_s8, %s897_s8   ;;  %s553_s7 = sphi %s609_s7, %s896_s7   ;;  %s549_s6 = sphi %s607_s6, %s895_s6  }
   0xa   : > { %s26_s19 = sadd.s32 1, %s581_s14  ;;  %s29_s20 = sadd.s32 1, %s585_s15 }
   0xb   : > { %p27_p0 = scmp.ge.s32.totalorder %s26_s19, 2  ;;  %s38_s21 = sadd.s32 1, %s569_s11 }
   0xc   : > { %p45_p1 = scmp.ne.s32.totalorder %s569_s11, %s565_s10  ;;  %p46_p2 = scmp.eq.s32.totalorder %s589_s16, 0 }
   0xd   : > { %s906_s19 = smov (%p27_p0, %s26_s19), 0  ;;  %s908_s20 = smov (!%p27_p0, %s29_s20), %s585_s15 }
   0xe   : > { %s34_s22 = ssub.s32 %s581_s14, %s906_s19  ;;  %p673_p3 = por %p46_p2, %p45_p1 }
   0xf   : > { %p31_p4 = scmp.ge.s32.totalorder %s908_s20, 2  ;;  %p51_p5 = scmp.ne.s32.totalorder %s565_s10, %s561_s9 }
  0x10   : > { %p52_p6 = scmp.eq.s32.totalorder %s299_s17, 0  ;;  %s301_s24 = sshll.u32 %s585_s15, 1 }
  0x11   : > { %s910_s20 = smov (%p31_p4, %s908_s20), 0  ;;  %s62_s26 = sadd.s32 %s581_s14, %s301_s24 }
  0x12   : > { %886 = sst [smem:[#allocation8_spill]] %s910_s20  ;;  %p683_p7 = por %p52_p6, %p51_p5 }
  0x13   : > { %s33_s27 = ssub.s32 %s585_s15, %s910_s20  ;;  %s302_s28 = sshll.u32 %s910_s20, 1 }
  0x14   : > { %s35_s29 = sor.u32 %s34_s22, %s33_s27  ;;  %s64_s30 = sadd.s32 %s302_s28, %s906_s19 }
  0x15   : > { %p36_p8 = scmp.eq.s32.totalorder %s35_s29, 0  ;;  %s65_s2 = ssub.s32 %s62_s26, %s64_s30 }
  0x16   : > { %p66_p9 = scmp.eq.s32.totalorder %s65_s2, 0  ;;  %s68_s3 = sadd.s32 1, %s557_s8 }
  0x17   : > { %s694_s4 = scalar_select %p36_p8, %s569_s11, %s38_s21  }
  0x18   : > { %s697_s5 = scalar_select %p66_p9, %s557_s8, %s68_s3  }
  0x19   : > { %p78_p10 = scmp.ne.s32.totalorder %s557_s8, %s553_s7  ;;  %p79_p11 = scmp.eq.s32.totalorder %s299_s17, 3 }
  0x1a   : > { %p84_p12 = scmp.ne.s32.totalorder %s553_s7, %s549_s6  ;;  %p85_p13 = scmp.eq.s32.totalorder %s300_s18, 3 }
  0x1b   : > { %p707_p0 = por %p79_p11, %p78_p10  ;;  %p343_p2 = scmp.lt.s32.totalorder %s589_s16, 4 }
  0x1c   : > { %p711_p1 = por %p85_p13, %p84_p12  ;;  %s105_s21 = sand.u32 1, %s569_s11  }
  0x1d   : > { %s888_s9 = scalar_select %p707_p0, 1, 0 }
  0x1e   : > { %s889_s22 = scalar_select %p711_p1, 1, 0 }
  0x1f   : > { %s328_s24 = sshll.u32 %s581_s14, 4  ;;  %s305_s26 = sshll.u32 %s105_s21, 7 }
  0x20   : > { %s308_s27 = sshll.u32 %s585_s15, 5  ;;  %s109_s17 = scalar_lea.vmem [#allocation2], %s305_s26 }
  0x21   : > { %s116_s28 = sadd.s32 %s328_s24, %s308_s27  ;;  %s119_s29 = sshll.u32 %s109_s17, 4  ;;  %s719_s29 = int_to_ptr.vmem [resolvable:$true] %s119_s29 }
  0x22   : > { %s309_s30 = sshll.u32 %s116_s28, 7  ;;  %p728_p4 = pnand %p343_p2, %p673_p3 }
  0x23   : > { %s724_s3 = scalar_lea.hbm %s881_s0, %s309_s30  ;;  %s733_s24 = scalar_lea.sflag [#allocation3], %s105_s21 }
  0x24   : > { %s437_s26 = scalar_lea.hbm %s724_s3, 2048  ;;  %p439_p8 = pneg %p728_p4 }
  0x25   : > { %p438_p6 = scmp.ne.s32.totalorder %s724_s3, %s437_s26  ;;  %s442_s28 = scalar_lea.hbm %s881_s0, 8192 }
  0x26   : > { %p443_p3 = scmp.lt.u32.totalorder %s724_s3, %s881_s0  ;;  %p444_p11 = scmp.lt.u32.totalorder %s442_s28, %s437_s26 }
  0x27   : > { %p440_p9 = pnand %p439_p8, %p438_p6  ;;  %p446_p13 = scmp.lt.u32.totalorder %s437_s26, %s724_s3 }
  0x28   : > { %p445_p12 = por %p444_p11, %p443_p3 }
  0x29   : > { %p441_p10 = pneg %p440_p9 }
  0x2a   : > { %p447_p2 = por %p446_p13, %p445_p12 }
  0x2c   : > { %p448_p5 = pnand %p447_p2, %p441_p10 }
  0x2e   : > { %451 = shalt.err (!%p448_p5)
}
  0x2f   : > { %s452_s21 = scalar_lea.vmem %s719_s29, 2048  ;;  %s591_s18 = smov [#allocation2]  }
  0x30   : > { %p453_p6 = scmp.ne.s32.totalorder %s719_s29, %s452_s21  ;;  %s457_s2 = sshll.u32 %s591_s18, 4  ;;  %s458_s2 = int_to_ptr.vmem [resolvable:$false] %s457_s2 }
  0x31   : > { %s459_s23 = scalar_lea.vmem %s458_s2, 4096  ;;  %p460_p0 = scmp.lt.s32.totalorder %s719_s29, %s458_s2 }
  0x32   : > { %p455_p9 = pnand %p453_p6, %p439_p8  ;;  %p461_p3 = scmp.lt.s32.totalorder %s459_s23, %s452_s21 }
  0x34   : > { %p456_p1 = pneg %p455_p9  ;;  %p462_p11 = por %p461_p3, %p460_p0 }
  0x36   : > { %p463_p12 = pnand %p462_p11, %p456_p1 }
  0x38   : > { %466 = shalt.err (!%p463_p12)
}
  0x39   : > { %s592_s26 = smov 128   ;;  %s593_s27 = smov 8  }
  0x3a   : > { %338 = dma.hbm_to_vmem [thread:$0]  (!%p728_p4), %s724_s3, 2048, %s719_s29, %s733_s24, %s592_s26, %s592_s26, %s593_s27  }
  0x3b   : > { %p127_p5 = scmp.lt.s32.totalorder %s589_s16, 5  ;;  %p891_p8 = scmp.ge.s32.totalorder %s589_s16, 1 }
  0x3d   : > { %p128_p10 = pnand %p891_p8, %p127_p5 }
  0x3e   : > { %s133_s28 = sand.u32 (!%p128_p10), 1, %s565_s10  }
  0x3f   : > { %131 = sbr.rel (%p128_p10) target bundleno = 100 (0x64), region = 24  ;;  %s311_s17 = sshll.u32 (!%p128_p10), %s133_s28, 7 }
  0x40   : > { %s134_s30 = scalar_lea.sflag (!%p128_p10), [#allocation3], %s133_s28  ;;  %s765_s21 = scalar_lea.vmem (!%p128_p10), [#allocation2], %s311_s17 }
  0x46   : > { %540 = dma.done.wait (%p683_p7), %s134_s30, 2048  }
  0x47   : > { %542 = vsyncadd (%p683_p7), %s134_s30, 4294965248  ;;  %s153_s20 = sand.u32 1, %s553_s7   ;;  %s322_s3 = sshll.u32 %s577_s13, 1  ;;  %v160_v0 = vld [vmem:[%s765_s21] sm:$0xff]  ;;  %v161_v1 = vld [vmem:[%s765_s21 + $0x10] sm:$0xff] }
  0x48   : > { %s312_s29 = sshll.u32 %s153_s20, 7  ;;  %s202_s24 = sadd.s32 %s573_s12, %s322_s3  ;;  %v162_v2 = vld [vmem:[%s765_s21 + $0x20] sm:$0xff]  ;;  %v163_v3 = vld [vmem:[%s765_s21 + $0x30] sm:$0xff]  ;;  %v176_v8 = vld [vmem:[%s765_s21 + $0x8] sm:$0xff] }
  0x49   : > { %s330_s25 = sshll.u32 %s202_s24, 11  ;;  %s779_s18 = scalar_lea.vmem [#allocation5], %s312_s29  ;;  %v164_v4 = vld [vmem:[%s765_s21 + $0x40] sm:$0xff]  ;;  %v165_v5 = vld [vmem:[%s765_s21 + $0x50] sm:$0xff]  ;;  %v177_v9 = vld [vmem:[%s765_s21 + $0x18] sm:$0xff] }
  0x4a   : > { %s210_s12 = sshll.u32 %s779_s18, 4  ;;  %168 = vst [vmem:[%s779_s18] sm:$0xff] %v160_v0  ;;  %169 = vst [vmem:[%s779_s18 + $0x8] sm:$0xff] %v161_v1  ;;  %v166_v6 = vld [vmem:[%s765_s21 + $0x60] sm:$0xff]  ;;  %v167_v7 = vld [vmem:[%s765_s21 + $0x70] sm:$0xff]  ;;  %s803_s23 = scalar_lea.hbm %s882_s1, %s330_s25  ;;  %s805_s12 = int_to_ptr.vmem [resolvable:$true] %s210_s12 }
  0x4b   : > { %170 = vst [vmem:[%s779_s18 + $0x10] sm:$0xff] %v162_v2  ;;  %171 = vst [vmem:[%s779_s18 + $0x18] sm:$0xff] %v163_v3  ;;  %v178_v10 = vld [vmem:[%s765_s21 + $0x28] sm:$0xff]  ;;  %v179_v11 = vld [vmem:[%s765_s21 + $0x38] sm:$0xff]  ;;  %s820_s26 = scalar_lea.sflag [#allocation4], %s153_s20  ;;  %s467_s27 = scalar_lea.vmem %s805_s12, 2048 }
  0x4c   : > { %172 = vst [vmem:[%s779_s18 + $0x20] sm:$0xff] %v164_v4  ;;  %173 = vst [vmem:[%s779_s18 + $0x28] sm:$0xff] %v165_v5  ;;  %v180_v12 = vld [vmem:[%s765_s21 + $0x48] sm:$0xff]  ;;  %v181_v13 = vld [vmem:[%s765_s21 + $0x58] sm:$0xff]  ;;  %p468_p7 = scmp.ne.s32.totalorder %s805_s12, %s467_s27  ;;  %p892_p0 = scmp.ne.s32.totalorder %s888_s9, 0 }
  0x4d   : > { %174 = vst [vmem:[%s779_s18 + $0x30] sm:$0xff] %v166_v6  ;;  %175 = vst [vmem:[%s779_s18 + $0x38] sm:$0xff] %v167_v7  ;;  %v182_v14 = vld [vmem:[%s765_s21 + $0x68] sm:$0xff]  ;;  %v183_v15 = vld [vmem:[%s765_s21 + $0x78] sm:$0xff]  ;;  %s594_s28 = smov [#allocation5]  }
  0x4e   : > { %313 = vst [vmem:[%s779_s18 + $0x40] sm:$0xff] %v176_v8  ;;  %314 = vst [vmem:[%s779_s18 + $0x48] sm:$0xff] %v177_v9  ;;  %p469_p1 = pnand %p468_p7, %p892_p0  ;;  %s471_s17 = sshll.u32 %s594_s28, 4  ;;  %s472_s17 = int_to_ptr.vmem [resolvable:$false] %s471_s17 }
  0x4f   : > { %315 = vst [vmem:[%s779_s18 + $0x50] sm:$0xff] %v178_v10  ;;  %316 = vst [vmem:[%s779_s18 + $0x58] sm:$0xff] %v179_v11  ;;  %s473_s30 = scalar_lea.vmem %s472_s17, 4096  ;;  %p474_p13 = scmp.lt.s32.totalorder %s805_s12, %s472_s17 }
  0x50   : > { %317 = vst [vmem:[%s779_s18 + $0x60] sm:$0xff] %v180_v12  ;;  %318 = vst [vmem:[%s779_s18 + $0x68] sm:$0xff] %v181_v13  ;;  %p470_p4 = pneg %p469_p1  ;;  %p475_p2 = scmp.lt.s32.totalorder %s473_s30, %s467_s27 }
  0x51   : > { %319 = vst [vmem:[%s779_s18 + $0x70] sm:$0xff] %v182_v14  ;;  %320 = vst [vmem:[%s779_s18 + $0x78] sm:$0xff] %v183_v15 }
  0x52   : > { %p476_p6 = por %p475_p2, %p474_p13 }
  0x54   : > { %p477_p9 = pnand %p476_p6, %p470_p4 }
  0x56   : > { %480 = shalt.err (!%p477_p9)
}
  0x57   : > { %s481_s21 = scalar_lea.hbm %s803_s23, 2048  ;;  %s485_s3 = scalar_lea.hbm %s882_s1, 8192 }
  0x58   : > { %p482_p3 = scmp.ne.s32.totalorder %s803_s23, %s481_s21  ;;  %p486_p5 = scmp.lt.u32.totalorder %s803_s23, %s882_s1 }
  0x59   : > { %p487_p8 = scmp.lt.u32.totalorder %s485_s3, %s481_s21  ;;  %p489_p7 = scmp.lt.u32.totalorder %s481_s21, %s803_s23 }
  0x5a   : > { %p483_p11 = pnand %p482_p3, %p892_p0 }
  0x5b   : > { %p488_p10 = por %p487_p8, %p486_p5 }
  0x5c   : > { %p484_p12 = pneg %p483_p11 }
  0x5d   : > { %p490_p1 = por %p489_p7, %p488_p10 }
  0x5f   : > { %p491_p4 = pnand %p490_p1, %p484_p12 }
  0x61   : > { %494 = shalt.err (!%p491_p4)
}
  0x62   : > { %s595_s18 = smov 128   ;;  %s596_s13 = smov 8  }
  0x63   : > { %333 = dma.vmem_to_hbm [thread:$0]  (%p892_p0), %s805_s12, 2048, %s803_s23, %s820_s26, %s595_s18, %s595_s18, %s596_s13  }
  0x64 PF: > { %p344_p13 = scmp.ge.s32.totalorder %s589_s16, 2  ;;  %s225_s2 = sand.u32 1, %s549_s6  }
  0x65   : > { %p893_p2 = scmp.ne.s32.totalorder %s889_s22, 0  ;;  %s226_s27 = scalar_lea.sflag [#allocation4], %s225_s2 }
  0x67   : > { %p340_p6 = pnand %p344_p13, %p893_p2 }
  0x69   : > { %544 = dma.done.wait (!%p340_p6), %s226_s27, 2048  }
  0x6a   : > { %546 = vsyncadd (!%p340_p6), %s226_s27, 4294965248  ;;  %s17_s16 = sadd.s32 1, %s589_s16   ;;  %s894_s23 = sld [smem:[#allocation8_spill]] }
  0x6b   : > { %p14_p9 = scmp.ge.s32.totalorder %s17_s16, 6   ;;  %s895_s6 = smov %s553_s7 }
  0x6c   : > { %s896_s7 = smov %s557_s8  ;;  %s897_s8 = smov %s697_s5 }
  0x6d   : > { %s898_s9 = smov %s565_s10  ;;  %s899_s10 = smov %s569_s11 }
  0x6e   : > { %s900_s11 = smov %s694_s4  ;;  %s901_s12 = smov %s581_s14 }
  0x6f   : > { %s902_s13 = smov %s585_s15  ;;  %s903_s14 = smov %s906_s19 }
  0x70   : > { %s904_s15 = smov %s894_s23  ;;  %16 = sbr.rel (!%p14_p9) target bundleno = 9 (0x9), region = 70 }
  0x77   :  { %231 = vsyncpa [#allocation3], 1 }
  0x78   :  { %233 = vsyncpa [#allocation3 + $0x1], 1 }
  0x79   :  { %234 = vsyncpa [#allocation4], 1 }
  0x7a   :  { %236 = vsyncpa [#allocation4 + $0x1], 1 }

</bundles_post_ra>
